<compile_context>
chip_gen: v5e
topology: v5e:2x2
jax: 0.10.0
libtpu: 0.0.40
codegen_flags: <defaults>
</compile_context>

<pallas_src>
import jax
import jax.numpy as jnp
from jax.experimental import pallas as pl
from jax.experimental.pallas import tpu as pltpu


def _mlp_kernel(xT_ref, w1_ref, b1_ref, w2_ref, b2_ref, out_ref):
    """One lane tile: xT (F, TILE_N) -> out (O, TILE_N), all operands VMEM-resident."""
    xT = xT_ref[...]                                            # (F, TILE_N)

    # Hidden layer, transposed: h = relu(W1 @ xT + b1), shape (H, TILE_N).
    # jnp.dot runs on the MXU even for F == 1 (Mosaic pads the tiny contraction dim),
    # keeping the VALU slot free for the bias + ReLU below.
    h = jnp.dot(w1_ref[...], xT, preferred_element_type=jnp.float32)
    h = jnp.maximum(h + b1_ref[...], 0.0)                       # (H,1) bias bcast + ReLU

    # Output layer, transposed: y = W2 @ h + b2, shape (O, TILE_N).
    # W2 is in its native PyTorch (O, H) layout -> direct vmatmul, no per-step transpose.
    y = jnp.dot(w2_ref[...], h, preferred_element_type=jnp.float32)
    out_ref[...] = (y + b2_ref[...]).astype(out_ref.dtype)


def _choose_tile_n(n):
    """Lane-tile width: scale with N instead of hardcoding the 128-lane minimum."""
    lane = 128
    n_lane = pl.cdiv(n, lane) * lane
    if n_lane <= 512:
        return int(n_lane)                # small batch: one/two steps, launch-bound anyway
    # Large batch: ~half the rows per step (>= 2 grid steps so v7x megacore uses both
    # TensorCores), clamped to [512, 2048] lanes.  2048 keeps the per-step VMEM footprint
    # (double-buffered x/y tiles + the (H, tile_n) hidden intermediate) at KB scale.
    t = pl.cdiv(n, 2 * lane) * lane
    return int(min(2048, max(512, t)))


def net_forward(x, w1, b1, w2, b2, *, tile_n=None):
    """Forward pass.

    x : (N, n_feature) float32
    w1: (n_hidden, n_feature), b1: (n_hidden,)      # PyTorch nn.Linear layouts
    w2: (n_output, n_hidden),  b2: (n_output,)
    returns (N, n_output) float32
    """
    N, F = x.shape
    H = w1.shape[0]
    O = w2.shape[0]
    if tile_n is None:
        tile_n = _choose_tile_n(N)

    # Present x as (F, N) so the batch lands on the lane axis.  For F == 1 this is a
    # free row-major reshape; for F > 1 it is a single small transpose pass.
    xT = (x.reshape(1, N) if F == 1 else x.T).astype(jnp.float32)
    w1k = w1.astype(jnp.float32)                    # (H, F)
    b1k = b1.reshape(H, 1).astype(jnp.float32)      # (H, 1)
    w2k = w2.astype(jnp.float32)                    # (O, H)  native PyTorch layout
    b2k = b2.reshape(O, 1).astype(jnp.float32)      # (O, 1)

    grid = (pl.cdiv(N, tile_n),)                    # ragged last block is masked by Pallas

    cost = pl.CostEstimate(
        flops=2 * N * F * H + 2 * N * H * O,
        transcendentals=0,
        bytes_accessed=4 * (N * F + H * F + H + O * H + O + N * O),
    )

    # Per-step VMEM estimate: double-buffered x/y lane tiles + (H, tile_n) hidden
    # intermediate + pinned weights.  Only raise the scoped limit if we ever approach
    # the conservative defaults (16 MiB v5e / 32 MiB v6e,v7x); never lower it.
    vmem_est = 4 * (2 * 2 * (F + O) * tile_n + H * tile_n + H * (F + 1) + O * (H + 1))
    extra = {}
    if vmem_est > 12 * 2**20:
        extra["vmem_limit_bytes"] = int(min(2 * vmem_est, 48 * 2**20))

    yT = pl.pallas_call(
        _mlp_kernel,
        out_shape=jax.ShapeDtypeStruct((O, N), jnp.float32),
        grid=grid,
        in_specs=[
            pl.BlockSpec((F, tile_n), lambda i: (0, i)),   # x tile, streamed over N
            pl.BlockSpec((H, F), lambda i: (0, 0)),        # weights/biases pinned to
            pl.BlockSpec((H, 1), lambda i: (0, 0)),        #   block (0,0): VMEM-resident
            pl.BlockSpec((O, H), lambda i: (0, 0)),
            pl.BlockSpec((O, 1), lambda i: (0, 0)),
        ],
        out_specs=pl.BlockSpec((O, tile_n), lambda i: (0, i)),
        compiler_params=pltpu.CompilerParams(
            dimension_semantics=("parallel",),             # megacore shard on v7x
            **extra,
        ),
        cost_estimate=cost,
    )(xT, w1k, b1k, w2k, b2k)

    # (O, N) -> (N, O); free reshape for the module's O == 1.
    return yT.reshape(N, 1) if O == 1 else yT.T


def init_params(key, n_feature, n_hidden, n_output):
    """torch.nn.Linear-style init U(-1/sqrt(fan_in), 1/sqrt(fan_in)), PyTorch layouts."""
    k1, k2, k3, k4 = jax.random.split(key, 4)
    bound1 = 1.0 / jnp.sqrt(n_feature)
    bound2 = 1.0 / jnp.sqrt(n_hidden)
    w1 = jax.random.uniform(k1, (n_hidden, n_feature), jnp.float32, -bound1, bound1)
    b1 = jax.random.uniform(k2, (n_hidden,), jnp.float32, -bound1, bound1)
    w2 = jax.random.uniform(k3, (n_output, n_hidden), jnp.float32, -bound2, bound2)
    b2 = jax.random.uniform(k4, (n_output,), jnp.float32, -bound2, bound2)
    return w1, b1, w2, b2


def _ref_forward(x, w1, b1, w2, b2):
    """Pure-JAX reference (same math, PyTorch layouts), high-precision dots."""
    hp = jax.lax.Precision.HIGHEST
    h = jnp.maximum(jnp.dot(x, w1.T, precision=hp) + b1, 0.0)
    return jnp.dot(h, w2.T, precision=hp) + b2


if __name__ == "__main__":
    # Shapes implied by the reference script: x = unsqueeze(linspace(-1, 1, 100), dim=1),
    # Net(n_feature=1, n_hidden=32, n_output=1).
    N, n_feature, n_hidden, n_output = 100, 1, 32, 1

    key = jax.random.PRNGKey(0)
    w1, b1, w2, b2 = init_params(key, n_feature, n_hidden, n_output)
    x = jnp.expand_dims(jnp.linspace(-1.0, 1.0, N, dtype=jnp.float32), axis=1)  # (100, 1)

    out = jax.block_until_ready(net_forward(x, w1, b1, w2, b2))
    ref = _ref_forward(x, w1, b1, w2, b2)
    assert out.shape == (N, n_output)
    assert jnp.allclose(out, ref, atol=1e-4, rtol=1e-4), float(jnp.max(jnp.abs(out - ref)))

    # Exercise the multi-step tiled path: larger batch, ragged last block, F > 1, O > 1.
    k_w, k_x = jax.random.split(jax.random.PRNGKey(0))
    N2, F2, H2, O2 = 1000, 3, 32, 2
    w1b, b1b, w2b, b2b = init_params(k_w, F2, H2, O2)
    x2 = jax.random.normal(k_x, (N2, F2), jnp.float32)
    out2 = jax.block_until_ready(net_forward(x2, w1b, b1b, w2b, b2b))
    ref2 = _ref_forward(x2, w1b, b1b, w2b, b2b)
    assert out2.shape == (N2, O2)
    assert jnp.allclose(out2, ref2, atol=1e-3, rtol=1e-3), float(jnp.max(jnp.abs(out2 - ref2)))

    print("KERNEL_OK")
</pallas_src>

<mosaic_0001>
module attributes {stable_mosaic.version = 11 : i64} {
  func.func @_mlp_kernel(%arg0: i32, %arg1: memref<1x128xf32, #tpu.memory_space<vmem>>, %arg2: memref<32x1xf32, #tpu.memory_space<vmem>>, %arg3: memref<32x1xf32, #tpu.memory_space<vmem>>, %arg4: memref<1x32xf32, #tpu.memory_space<vmem>>, %arg5: memref<1x1xf32, #tpu.memory_space<vmem>>, %arg6: memref<1x128xf32, #tpu.memory_space<vmem>>) attributes {dimension_semantics = [#tpu.dimension_semantics<parallel>], iteration_bounds = array<i64: 1>, scalar_prefetch = 0 : i64, scratch_operands = 0 : i64, tpu.core_type = #tpu.core_type<tc>, window_params = [{transform_indices = @transform_0, window_bounds = array<i64: 1, 128>}, {pipeline_mode = #tpu.pipeline_mode<synchronous>, transform_indices = @transform_1, window_bounds = array<i64: 32, 1>}, {pipeline_mode = #tpu.pipeline_mode<synchronous>, transform_indices = @transform_2, window_bounds = array<i64: 32, 1>}, {pipeline_mode = #tpu.pipeline_mode<synchronous>, transform_indices = @transform_3, window_bounds = array<i64: 1, 32>}, {pipeline_mode = #tpu.pipeline_mode<synchronous>, transform_indices = @transform_4, window_bounds = array<i64: 1, 1>}, {transform_indices = @transform_5, window_bounds = array<i64: 1, 128>}]} {
    %c0 = arith.constant 0 : index
    %c0_0 = arith.constant 0 : index
    %0 = vector.load %arg1[%c0, %c0_0] : memref<1x128xf32, #tpu.memory_space<vmem>>, vector<1x128xf32>
    %c0_1 = arith.constant 0 : index
    %c0_2 = arith.constant 0 : index
    %1 = vector.load %arg2[%c0_1, %c0_2] : memref<32x1xf32, #tpu.memory_space<vmem>>, vector<32x1xf32>
    %cst = arith.constant dense<0.000000e+00> : vector<32x128xf32>
    %2 = tpu.matmul %1, %0, %cst {dimension_numbers = #tpu.dot_dimension_numbers<[1], [0], [0], [1], [0, 0, 1, 1], [], []>} : vector<32x1xf32>, vector<1x128xf32>, vector<32x128xf32> -> vector<32x128xf32>
    %c0_3 = arith.constant 0 : index
    %c0_4 = arith.constant 0 : index
    %3 = vector.load %arg3[%c0_3, %c0_4] : memref<32x1xf32, #tpu.memory_space<vmem>>, vector<32x1xf32>
    %4 = vector.broadcast %3 : vector<32x1xf32> to vector<32x128xf32>
    %5 = arith.addf %2, %4 : vector<32x128xf32>
    %cst_5 = arith.constant 0.000000e+00 : f32
    %6 = vector.broadcast %cst_5 : f32 to vector<32x128xf32>
    %7 = arith.maximumf %5, %6 : vector<32x128xf32>
    %c0_6 = arith.constant 0 : index
    %c0_7 = arith.constant 0 : index
    %8 = vector.load %arg4[%c0_6, %c0_7] : memref<1x32xf32, #tpu.memory_space<vmem>>, vector<1x32xf32>
    %cst_8 = arith.constant dense<0.000000e+00> : vector<1x128xf32>
    %9 = tpu.matmul %8, %7, %cst_8 {dimension_numbers = #tpu.dot_dimension_numbers<[1], [0], [0], [1], [0, 0, 1, 1], [], []>} : vector<1x32xf32>, vector<32x128xf32>, vector<1x128xf32> -> vector<1x128xf32>
    %c0_9 = arith.constant 0 : index
    %c0_10 = arith.constant 0 : index
    %10 = vector.load %arg5[%c0_9, %c0_10] : memref<1x1xf32, #tpu.memory_space<vmem>>, vector<1x1xf32>
    %11 = vector.broadcast %10 : vector<1x1xf32> to vector<1x128xf32>
    %12 = arith.addf %9, %11 : vector<1x128xf32>
    %c0_11 = arith.constant 0 : index
    %c0_12 = arith.constant 0 : index
    %13 = vector.load %arg6[%c0_11, %c0_12] : memref<1x128xf32, #tpu.memory_space<vmem>>, vector<1x128xf32>
    tpu.vector_store %arg6[%c0_11, %c0_12], %12 {strides = array<i32>} : memref<1x128xf32, #tpu.memory_space<vmem>>, vector<1x128xf32>,
    return
  }
  func.func @transform_0(%arg0: i32) -> (i32, i32) {
    %c0_i32 = arith.constant 0 : i32
    %c0_i32_0 = arith.constant 0 : i32
    return %c0_i32, %arg0 : i32, i32
  }
  func.func @transform_1(%arg0: i32) -> (i32, i32) {
    %c0_i32 = arith.constant 0 : i32
    %c0_i32_0 = arith.constant 0 : i32
    %c0_i32_1 = arith.constant 0 : i32
    return %c0_i32, %c0_i32_0 : i32, i32
  }
  func.func @transform_2(%arg0: i32) -> (i32, i32) {
    %c0_i32 = arith.constant 0 : i32
    %c0_i32_0 = arith.constant 0 : i32
    %c0_i32_1 = arith.constant 0 : i32
    return %c0_i32, %c0_i32_0 : i32, i32
  }
  func.func @transform_3(%arg0: i32) -> (i32, i32) {
    %c0_i32 = arith.constant 0 : i32
    %c0_i32_0 = arith.constant 0 : i32
    %c0_i32_1 = arith.constant 0 : i32
    return %c0_i32, %c0_i32_0 : i32, i32
  }
  func.func @transform_4(%arg0: i32) -> (i32, i32) {
    %c0_i32 = arith.constant 0 : i32
    %c0_i32_0 = arith.constant 0 : i32
    %c0_i32_1 = arith.constant 0 : i32
    return %c0_i32, %c0_i32_0 : i32, i32
  }
  func.func @transform_5(%arg0: i32) -> (i32, i32) {
    %c0_i32 = arith.constant 0 : i32
    %c0_i32_0 = arith.constant 0 : i32
    return %c0_i32, %arg0 : i32, i32
  }
}

</mosaic_0001>

<bundles_post_ra>
// kernel: tpu_custom_call.1
= control target key start
LH: loop header
LB: loop body
LE: loop exit
PB: predicated region body
PF: predicated region fallthrough
CT: control target
= control target key end

     0   :  { %s262_s0 = inlined_call_operand.vmem [shape: f32[1,100], index: 0, kind: input, shape index: {}]   ;;  %s263_s1 = inlined_call_operand.vmem [shape: f32[32,1], index: 1, kind: input, shape index: {}]   ;;  %s264_s2 = inlined_call_operand.vmem [shape: f32[32,1], index: 2, kind: input, shape index: {}]   ;;  %s265_s3 = inlined_call_operand.vmem [shape: f32[1,32], index: 3, kind: input, shape index: {}]   ;;  %s266_s4 = inlined_call_operand.<no memory space> [shape: f32[1,1], index: 4, kind: input, shape index: {}]   ;;  %s267_s5 = inlined_call_operand.hbm [shape: f32[1,100], index: 5, kind: output, shape index: {}]  }
   0x1   :  { %v10_v0 = vstv %s266_s4 }
   0x2   :  { %11 = vst [vmem:[#allocation2] sm:$0x1] %v10_v0 }
   0x3   :  { %v23_v1 = vld [vmem:[%s262_s0] sm:$0x1]  ;;  %vm65_vm0 = vcmask 1040384   ;;  %v25_v2 = vld [vmem:[%s263_s1 + $0x8] sm:$0xff]  ;;  %vm52_vm1 = vcmask 7168   ;;  %v27_v3 = vld [vmem:[%s263_s1 + $0x18] sm:$0xff] }
   0x4   :  { %157 = vmatpush.msk.msra.mxu2 %vm65_vm0, %v23_v1  ;;  %158 = vmatpush.msk.msra.mxu3 %vm65_vm0, %v23_v1  ;;  %v31_v4 = vld [vmem:[%s264_s2 + $0x18] sm:$0xff]  ;;  %v24_v5 = vld [vmem:[%s263_s1] sm:$0xff]  ;;  %v190_v6 = vmov 0   ;;  %v29_v7 = vld [vmem:[%s264_s2 + $0x8] sm:$0xff] }
   0x5   :  { %153 = vmatmul.msk.f32.vlgmr.msra.gmra.mxu2 %vm52_vm1, %v25_v2  ;;  %155 = vmatmul.msk.f32.vlgmr.msra.gmra.mxu3 %vm52_vm1, %v27_v3 }
   0x6   :  { %161 = vset.pattern.permute.xlu0 %v190_v6  ;;  %151 = vmatpush.msk.msra.mxu0 %vm65_vm0, %v23_v1 }
   0x7   :  { %12 = vsyncpa [#allocation4], 0  ;;  %49 = vperm.xlu0 %161, %v31_v4   ;;  %152 = vmatmul.msk.f32.vlgmr.msra.gmra.mxu0 %vm52_vm1, %v24_v5  ;;  %v26_v8 = vld [vmem:[%s263_s1 + $0x10] sm:$0xff]  ;;  %v28_v10 = vld [vmem:[%s264_s2] sm:$0xff]  ;;  %vm110_vm2 = vcmask 261120   ;;  %s191_s11 = smov [#allocation3]  }
   0x8   :  { %162 = vset.pattern.permute.xlu1 %v190_v6  ;;  %163 = vset.pattern.permute.xlu2 %v190_v6  ;;  %v30_v9 = vld [vmem:[%s264_s2 + $0x10] sm:$0xff]  ;;  %v102_v28 = vld [vmem:[%s265_s3] sm:$0x1]  ;;  %s140_s12 = sshll.u32 %s191_s11, 4  ;;  %s142_s15 = sshll.u32 %s267_s5, 4  ;;  %s141_s12 = int_to_ptr.vmem [resolvable:$true] %s140_s12  ;;  %s143_s15 = int_to_ptr.hbm [resolvable:$true] %s142_s15 }
   0x9   :  { %39 = vperm.xlu1 %162, %v29_v7   ;;  %v103_v11 = vld [vmem:[#allocation2] sm:$0x1] }
   0xa   :  { %106 = vperm.xlu2 %163, %v103_v11  }
   0xd   :  { %154 = vmatmul.msk.f32.gmra.mxu2 %vm52_vm1, %v26_v8 }
   0xf   :  { %44 = vperm.xlu0 %161, %v30_v9  }
  0x11   :  { %34 = vperm.xlu1 %162, %v28_v10  }
  0x64   :  { %v107_v29 = vpop.permute.xlu2 %106 }
  0x65   :  { %v109_v30 = vperm.slane %v107_v29, 0 }
  0x79   :  { %v50_v12 = vpop.permute.xlu0 %49 }
  0x7b   :  { %v40_v13 = vpop.permute.xlu1 %39 }
  0x81   :  { %v45_v18 = vpop.permute.xlu0 %44 }
  0x83   :  { %v35_v19 = vpop.permute.xlu1 %34 }
  0x84   :  { %v86_v20 = vpop.f32.mrf.mxu0 }
  0x85   :  { %v87_v24 = vadd.f32 %v86_v20, %v35_v19 }
  0x87   :  { %v98_v27 = vmax.f32 %v87_v24, 0.0 }
  0x88   :  { %v89_v14 = vpop.f32.mrf.mxu2  ;;  %v95_v15 = vpop.f32.mrf.mxu3 }
  0x89   :  { %v96_v16 = vadd.f32 %v95_v15, %v50_v12  ;;  %v90_v22 = vadd.f32 %v89_v14, %v40_v13 }
  0x8b   :  { %v101_v17 = vmax.f32 %v96_v16, 0.0  ;;  %v99_v26 = vmax.f32 %v90_v22, 0.0 }
  0x8d   :  { %126 = vmatpush.msra.mxu1 %v101_v17 }
  0x90   :  { %v92_v21 = vpop.f32.mrf.mxu2 }
  0x91   :  { %v93_v23 = vadd.f32 %v92_v21, %v45_v18 }
  0x93   :  { %v100_v25 = vmax.f32 %v93_v23, 0.0 }
  0x95   :  { %127 = vmatpush.msra.mxu1 %v100_v25 }
  0x97   :  { %128 = vmatpush.msra.mxu1 %v99_v26 }
  0x99   :  { %129 = vmatpush.msra.mxu1 %v98_v27 }
  0x9a   :  { %156 = vmatmul.msk.f32.vlgmr.msra.gmra.mxu1 %vm110_vm2, %v102_v28 }
 0x117   :  { %v131_v31 = vpop.f32.mrf.mxu1 }
 0x118   :  { %v132_v32 = vadd.f32 %v131_v31, %v109_v30 }
 0x11a   :  { %134 = vst [vmem:[#allocation3] sm:$0x1] %v132_v32 }
 0x11b   :  { %145 = dma.vmem_to_hbm [thread:$0]  %s141_s12, 16, %s143_s15, [#allocation4]  }
 0x11c   :  { %188 = dma.done.wait [#allocation4], 16  }
 0x11d   :  { %189 = vsyncadd [#allocation4], 4294967280 }
 0x11e   :  { %150 = vsyncpa [#allocation4], 1 }

</bundles_post_ra>
